<compile_context>
chip_gen: v7x
topology: tpu7x:2x2x1
jax: 0.10.0
libtpu: 0.0.40
codegen_flags: <defaults>
</compile_context>

<pallas_src>
import functools

import jax
import jax.numpy as jnp
from jax.experimental import pallas as pl
from jax.experimental.pallas import tpu as pltpu

SR = 16000
N_FFT = int(SR * 0.025)        # 400
HOP = int(SR * 0.01)           # 160
N_MELS = 64
N_FREQ = N_FFT // 2 + 1        # 201
EPS = 1e-8
CONV_OUT = 512

MEL_LANES = 128                # log-mel output padded 64 -> 128 lanes (unmasked vst)
BASIS_LANES = 512              # 2 * N_FREQ = 402 -> 512 fused cos|sin basis lanes
ROW_TILE = 256                 # M / P row tile (MXU-friendly); shrinks for tiny inputs
VMEM_LIMIT = 32 * 1024 * 1024  # explicit scoped-VMEM cap, safe on v5e/v6e/v7x


def _round_up(x, m):
    return ((x + m - 1) // m) * m


def _row_tile(n):
    """256-row tiles for real inputs, one tight multiple-of-8 tile when tiny."""
    return ROW_TILE if n >= ROW_TILE else _round_up(max(n, 1), 8)


# ----------------------------- spectrogram constants (glue) -----------------
def _hann_window(n):
    i = jnp.arange(n, dtype=jnp.float32)
    return 0.5 * (1.0 - jnp.cos(2.0 * jnp.pi * i / n))          # periodic hann


def _windowed_dft_basis():
    """(N_FFT, BASIS_LANES): hann-windowed [cos | sin] DFT bases, zero-padded lanes."""
    n = jnp.arange(N_FFT, dtype=jnp.float32)[:, None]
    k = jnp.arange(N_FREQ, dtype=jnp.float32)[None, :]
    ang = 2.0 * jnp.pi * n * k / N_FFT
    basis = jnp.concatenate([jnp.cos(ang), jnp.sin(ang)], axis=1)        # (400, 402)
    basis = basis * _hann_window(N_FFT)[:, None]                         # fold window in
    return jnp.pad(basis, ((0, 0), (0, BASIS_LANES - 2 * N_FREQ))).astype(jnp.float32)


def _mel_fbank2():
    """(BASIS_LANES, MEL_LANES): mel fbank stacked [fb; fb] (re^2 + im^2 share filters)."""
    def hz_to_mel(f):
        return 2595.0 * jnp.log10(1.0 + f / 700.0)

    def mel_to_hz(m):
        return 700.0 * (jnp.power(10.0, m / 2595.0) - 1.0)

    all_freqs = jnp.linspace(0.0, SR / 2.0, N_FREQ)
    m_pts = jnp.linspace(hz_to_mel(0.0), hz_to_mel(SR / 2.0), N_MELS + 2)
    f_pts = mel_to_hz(m_pts)
    f_diff = f_pts[1:] - f_pts[:-1]
    slopes = f_pts[None, :] - all_freqs[:, None]
    down = -slopes[:, :-2] / f_diff[:-1]
    up = slopes[:, 2:] / f_diff[1:]
    fb = jnp.maximum(jnp.minimum(down, up), 0.0).astype(jnp.float32)     # (201, 64)
    fb2 = jnp.concatenate([fb, fb], axis=0)                              # (402, 64)
    return jnp.pad(fb2, ((0, BASIS_LANES - 2 * N_FREQ), (0, MEL_LANES - N_MELS)))


# ----------------------------- Pallas kernel 1: log-mel spectrogram ---------
def _logmel_kernel(frames_ref, basis_ref, fb2_ref, out_ref):
    # One fused windowed-DFT matmul: (TM, 400) @ (400, 512) -> [re | im | zeros]
    # NOTE: default MXU precision; pass precision=HIGHEST here if exact
    # torchaudio parity is required (extra MXU passes).
    proj = jnp.dot(frames_ref[...], basis_ref[...], preferred_element_type=jnp.float32)
    power = proj * proj                                    # re^2 / im^2, padded lanes stay 0
    mel = jnp.dot(power, fb2_ref[...], preferred_element_type=jnp.float32)   # (TM, 128)
    out_ref[...] = jnp.log(mel + EPS)


def log_mel_spectrogram(wave):
    """wave: (N, L) float32 -> (N, T, N_MELS) float32 (time-major, mel in lanes)."""
    N, L = wave.shape
    T = L // HOP + 1                                       # center=True framing
    padded = jnp.pad(wave.astype(jnp.float32),
                     ((0, 0), (N_FFT // 2, N_FFT // 2)), mode="reflect")
    # TODO(synk): the frame gather materializes (N, T, 400) in HBM; for very long
    # audio, stream the padded wave and build overlapping frames in-kernel instead.
    idx = jnp.arange(T)[:, None] * HOP + jnp.arange(N_FFT)[None, :]
    frames = padded[:, idx].reshape(N * T, N_FFT)          # (M, 400)

    M = N * T
    tm = _row_tile(M)
    m_pad = _round_up(M, tm)
    frames = jnp.pad(frames, ((0, m_pad - M), (0, 0)))     # zero rows -> log(EPS), sliced away

    basis = _windowed_dft_basis()
    fb2 = _mel_fbank2()

    out = pl.pallas_call(
        _logmel_kernel,
        out_shape=jax.ShapeDtypeStruct((m_pad, MEL_LANES), jnp.float32),
        grid_spec=pltpu.PrefetchScalarGridSpec(
            num_scalar_prefetch=0,
            grid=(m_pad // tm,),
            in_specs=[
                pl.BlockSpec((tm, N_FFT), lambda i: (i, 0)),
                pl.BlockSpec((N_FFT, BASIS_LANES), lambda i: (0, 0)),
                pl.BlockSpec((BASIS_LANES, MEL_LANES), lambda i: (0, 0)),
            ],
            out_specs=pl.BlockSpec((tm, MEL_LANES), lambda i: (i, 0)),
        ),
        compiler_params=pltpu.CompilerParams(
            dimension_semantics=("parallel",),
            vmem_limit_bytes=VMEM_LIMIT,
        ),
    )(frames, basis, fb2)
    return out[:M, :N_MELS].reshape(N, T, N_MELS)


# ----------------------------- Pallas kernel 2: conv + accumulating pool ----
def _enc_pool_kernel(patch_ref, wconv_ref, bconv_ref, out_ref, acc_ref, *, p_actual, tp):
    pj = pl.program_id(1)

    @pl.when(pj == 0)
    def _():
        acc_ref[...] = jnp.zeros_like(acc_ref)

    feat = jnp.dot(patch_ref[0], wconv_ref[...], preferred_element_type=jnp.float32)
    feat = jnp.maximum(feat + bconv_ref[...], 0.0)                        # bias + ReLU
    row = pj * tp + jax.lax.broadcasted_iota(jnp.int32, (tp, 1), 0)
    feat = jnp.where(row < p_actual, feat, 0.0)                           # mask padded patch rows
    acc_ref[...] += jnp.sum(feat, axis=0, keepdims=True)

    @pl.when(pj == pl.num_programs(1) - 1)
    def _():
        out_ref[0] = acc_ref[...] * (1.0 / p_actual)                      # AdaptiveAvgPool2d((1,1))


# ----------------------------- full Spec_Encoder forward --------------------
def spec_encoder_forward(waveform, params, norm_audio=False):
    """waveform: (B, C, L) float32 -> (B, out_dim) float32."""
    B, C, L = waveform.shape
    logmel = log_mel_spectrogram(waveform.reshape(B * C, L))              # (B*C, T, 64)
    T = logmel.shape[1]
    logmel = logmel.reshape(B, C, T, N_MELS)
    if norm_audio:
        # PyTorch: log_spec /= log_spec.sum(dim=-2)  (mel axis; here the last axis)
        logmel = logmel / jnp.sum(logmel, axis=-1, keepdims=True)

    # CoordConv built channels-last (B, H=mel, W=time, C+2) — no NCHW blowup.
    H, W = N_MELS, T
    x = jnp.transpose(logmel, (0, 3, 2, 1))                               # (B, 64, T, C)
    lin_h = jnp.broadcast_to(
        jnp.linspace(-1.0, 1.0, H, dtype=jnp.float32)[None, :, None, None], (B, H, W, 1))
    lin_w = jnp.broadcast_to(
        jnp.linspace(-1.0, 1.0, W, dtype=jnp.float32)[None, None, :, None], (B, H, W, 1))
    x = jnp.concatenate([x, lin_h, lin_w], axis=-1)                       # (B, H, W, Cin)
    cin = C + 2

    # TODO(synk): the real feature_extractor is an injected backbone returning a dict
    # of one feature map; substituted with Conv2d(Cin->512, k=3, s=2, p=1) + ReLU.
    ho = (H + 2 - 3) // 2 + 1
    wo = (W + 2 - 3) // 2 + 1
    x_pad = jnp.pad(x, ((0, 0), (1, 1), (1, 1), (0, 0)))
    taps = [x_pad[:, kh:kh + 2 * ho:2, kw:kw + 2 * wo:2, :]
            for kh in range(3) for kw in range(3)]
    patches = jnp.concatenate(taps, axis=-1).reshape(B, ho * wo, 9 * cin)  # channels-last im2col

    P, K = ho * wo, 9 * cin
    tp = _row_tile(P)
    p_pad = _round_up(P, tp)
    k_pad = _round_up(K, 128)                                             # lane-dense contraction
    patches = jnp.pad(patches, ((0, 0), (0, p_pad - P), (0, k_pad - K)))

    # conv weight (OUT, Cin, KH, KW) -> (KH, KW, Cin, OUT) -> (K, OUT), zero-padded rows
    w_conv = jnp.transpose(params["w_conv"], (2, 3, 1, 0)).reshape(K, CONV_OUT)
    w_conv = jnp.pad(w_conv, ((0, k_pad - K), (0, 0)))
    b_conv = params["b_conv"].reshape(1, CONV_OUT)

    pooled = pl.pallas_call(
        functools.partial(_enc_pool_kernel, p_actual=P, tp=tp),
        out_shape=jax.ShapeDtypeStruct((B, 1, CONV_OUT), jnp.float32),
        grid_spec=pltpu.PrefetchScalarGridSpec(
            num_scalar_prefetch=0,
            grid=(B, p_pad // tp),                                        # reduction axis last
            in_specs=[
                pl.BlockSpec((1, tp, k_pad), lambda b, p: (b, p, 0)),
                pl.BlockSpec((k_pad, CONV_OUT), lambda b, p: (0, 0)),
                pl.BlockSpec((1, CONV_OUT), lambda b, p: (0, 0)),
            ],
            out_specs=pl.BlockSpec((1, 1, CONV_OUT), lambda b, p: (b, 0, 0)),
            scratch_shapes=[pltpu.VMEM((1, CONV_OUT), jnp.float32)],
        ),
        compiler_params=pltpu.CompilerParams(
            dimension_semantics=("parallel", "arbitrary"),
            vmem_limit_bytes=VMEM_LIMIT,
        ),
    )(patches, w_conv, b_conv)

    pooled = pooled.reshape(B, CONV_OUT)
    # Linear(512, out_dim): one batched lane-dense matmul outside the per-batch grid.
    return pooled @ params["w_fc"].T + params["b_fc"][None, :]


def init_params(key, in_ch, out_dim):
    k1, k2, k3, k4 = jax.random.split(key, 4)
    return {
        "w_conv": jax.random.normal(k1, (CONV_OUT, in_ch, 3, 3), jnp.float32) * 0.05,
        "b_conv": jax.random.normal(k2, (CONV_OUT,), jnp.float32) * 0.01,
        "w_fc": jax.random.normal(k3, (out_dim, CONV_OUT), jnp.float32) * 0.02,
        "b_fc": jax.random.normal(k4, (out_dim,), jnp.float32) * 0.01,
    }


if __name__ == "__main__":
    key = jax.random.PRNGKey(0)
    kx, kp = jax.random.split(key)
    B, C, L = 2, 1, 1600                       # 1600 samples -> T = 11 frames
    waveform = jax.random.normal(kx, (B, C, L), jnp.float32) * 0.1
    params = init_params(kp, in_ch=C + 2, out_dim=32)

    out = spec_encoder_forward(waveform, params, norm_audio=False)
    out = jax.block_until_ready(out)
    assert out.shape == (B, 32) and out.dtype == jnp.float32
    assert bool(jnp.all(jnp.isfinite(out)))
    print("KERNEL_OK")
</pallas_src>

<mosaic_0001>
module attributes {stable_mosaic.version = 11 : i64} {
  func.func @_logmel_kernel(%arg0: i32, %arg1: memref<24x400xf32, #tpu.memory_space<vmem>>, %arg2: memref<400x512xf32, #tpu.memory_space<vmem>>, %arg3: memref<512x128xf32, #tpu.memory_space<vmem>>, %arg4: memref<24x128xf32, #tpu.memory_space<vmem>>) attributes {dimension_semantics = [#tpu.dimension_semantics<parallel>], iteration_bounds = array<i64: 1>, scalar_prefetch = 0 : i64, scratch_operands = 0 : i64, tpu.core_type = #tpu.core_type<tc>, window_params = [{transform_indices = @transform_0, window_bounds = array<i64: 24, 400>}, {pipeline_mode = #tpu.pipeline_mode<synchronous>, transform_indices = @transform_1, window_bounds = array<i64: 400, 512>}, {pipeline_mode = #tpu.pipeline_mode<synchronous>, transform_indices = @transform_2, window_bounds = array<i64: 512, 128>}, {transform_indices = @transform_3, window_bounds = array<i64: 24, 128>}]} {
    %c0 = arith.constant 0 : index
    %c0_0 = arith.constant 0 : index
    %0 = vector.load %arg1[%c0, %c0_0] : memref<24x400xf32, #tpu.memory_space<vmem>>, vector<24x400xf32>
    %c0_1 = arith.constant 0 : index
    %c0_2 = arith.constant 0 : index
    %1 = vector.load %arg2[%c0_1, %c0_2] : memref<400x512xf32, #tpu.memory_space<vmem>>, vector<400x512xf32>
    %cst = arith.constant dense<0.000000e+00> : vector<24x512xf32>
    %2 = tpu.matmul %0, %1, %cst {dimension_numbers = #tpu.dot_dimension_numbers<[1], [0], [0], [1], [0, 0, 1, 1], [], []>} : vector<24x400xf32>, vector<400x512xf32>, vector<24x512xf32> -> vector<24x512xf32>
    %3 = arith.mulf %2, %2 : vector<24x512xf32>
    %c0_3 = arith.constant 0 : index
    %c0_4 = arith.constant 0 : index
    %4 = vector.load %arg3[%c0_3, %c0_4] : memref<512x128xf32, #tpu.memory_space<vmem>>, vector<512x128xf32>
    %cst_5 = arith.constant dense<0.000000e+00> : vector<24x128xf32>
    %5 = tpu.matmul %3, %4, %cst_5 {dimension_numbers = #tpu.dot_dimension_numbers<[1], [0], [0], [1], [0, 0, 1, 1], [], []>} : vector<24x512xf32>, vector<512x128xf32>, vector<24x128xf32> -> vector<24x128xf32>
    %cst_6 = arith.constant 9.99999993E-9 : f32
    %6 = vector.broadcast %cst_6 : f32 to vector<24x128xf32>
    %7 = arith.addf %5, %6 : vector<24x128xf32>
    %8 = math.log %7 : vector<24x128xf32>
    %c0_7 = arith.constant 0 : index
    %c0_8 = arith.constant 0 : index
    %9 = vector.load %arg4[%c0_7, %c0_8] : memref<24x128xf32, #tpu.memory_space<vmem>>, vector<24x128xf32>
    tpu.vector_store %arg4[%c0_7, %c0_8], %8 {strides = array<i32>} : memref<24x128xf32, #tpu.memory_space<vmem>>, vector<24x128xf32>,
    return
  }
  func.func @transform_0(%arg0: i32) -> (i32, i32) {
    %c0_i32 = arith.constant 0 : i32
    %c0_i32_0 = arith.constant 0 : i32
    return %arg0, %c0_i32 : i32, i32
  }
  func.func @transform_1(%arg0: i32) -> (i32, i32) {
    %c0_i32 = arith.constant 0 : i32
    %c0_i32_0 = arith.constant 0 : i32
    %c0_i32_1 = arith.constant 0 : i32
    return %c0_i32, %c0_i32_0 : i32, i32
  }
  func.func @transform_2(%arg0: i32) -> (i32, i32) {
    %c0_i32 = arith.constant 0 : i32
    %c0_i32_0 = arith.constant 0 : i32
    %c0_i32_1 = arith.constant 0 : i32
    return %c0_i32, %c0_i32_0 : i32, i32
  }
  func.func @transform_3(%arg0: i32) -> (i32, i32) {
    %c0_i32 = arith.constant 0 : i32
    %c0_i32_0 = arith.constant 0 : i32
    return %arg0, %c0_i32 : i32, i32
  }
}

</mosaic_0001>

<bundles_post_ra>
// kernel: tpu_custom_call.1
= control target key start
LH: loop header
LB: loop body
LE: loop exit
PB: predicated region body
PF: predicated region fallthrough
CT: control target
= control target key end

     0   :  { %8 = vsyncpa [#allocation3], 0  ;;  %s1440_s0 = inlined_call_operand.hbm [shape: f32[24,400], index: 0, kind: input, shape index: {}]   ;;  %s1441_s1 = inlined_call_operand.hbm [shape: f32[400,512], index: 1, kind: input, shape index: {}]   ;;  %s1442_s2 = inlined_call_operand.hbm [shape: f32[512,128], index: 2, kind: input, shape index: {}]   ;;  %s1443_s3 = inlined_call_operand.hbm [shape: f32[24,128], index: 3, kind: output, shape index: {}]  }
   0x1   :  { %9 = vsyncpa [#allocation6], 0 }
   0x2   :  { %10 = vsyncpa [#allocation4], 0  ;;  %s1345_s12 = smov [#allocation5]   ;;  %s1346_s14 = smov [#allocation2]  }
   0x3   :  { %s28_s13 = sshll.u32 %s1345_s12, 4  ;;  %s16_s15 = sshll.u32 %s1346_s14, 4  ;;  %s29_s13 = int_to_ptr.vmem [resolvable:$true] %s28_s13  ;;  %s1373_s15 = int_to_ptr.vmem [resolvable:$true] %s16_s15 }
   0x4   :  { %s1251_s18 = scalar_lea.hbm %s1441_s1, 25600 }
   0x5   :  { %p1252_p0 = scmp.ne.s32.totalorder %s1441_s1, %s1251_s18  ;;  %p1255_p1 = scmp.lt.u32.totalorder %s1251_s18, %s1441_s1 }
   0x7   :  { %p1257_p2 = pnand %p1255_p1, %p1252_p0 }
   0x9   :  { %1260 = shalt.err (!%p1257_p2)
}
   0xa   :  { %s1261_s23 = scalar_lea.vmem %s29_s13, 25600  ;;  %p1266_p4 = scmp.lt.s32.totalorder %s29_s13, %s29_s13 }
   0xb   :  { %p1262_p3 = scmp.ne.s32.totalorder %s29_s13, %s1261_s23  ;;  %p1267_p5 = scmp.lt.s32.totalorder %s1261_s23, %s1261_s23 }
   0xd   :  { %p1268_p6 = por %p1267_p5, %p1266_p4 }
   0xf   :  { %p1269_p7 = pnand %p1268_p6, %p1262_p3 }
  0x11   :  { %1272 = shalt.err (!%p1269_p7)
}
  0x12   :  { %s1347_s24 = smov 512   ;;  %s1348_s25 = smov 32  }
  0x13   :  { %34 = dma.hbm_to_vmem [thread:$0]  %s1441_s1, 25600, %s29_s13, [#allocation6], %s1347_s24, %s1347_s24, %s1348_s25  }
  0x14   :  { %s1273_s30 = scalar_lea.hbm %s1440_s0, 1536 }
  0x15   :  { %p1274_p8 = scmp.ne.s32.totalorder %s1440_s0, %s1273_s30  ;;  %p1277_p9 = scmp.lt.u32.totalorder %s1273_s30, %s1440_s0 }
  0x17   :  { %p1279_p10 = pnand %p1277_p9, %p1274_p8 }
  0x19   :  { %1282 = shalt.err (!%p1279_p10)
}
  0x1a   :  { %s1283_s8 = scalar_lea.vmem %s1373_s15, 1536  ;;  %p1288_p12 = scmp.lt.s32.totalorder %s1373_s15, %s1373_s15 }
  0x1b   :  { %p1284_p11 = scmp.ne.s32.totalorder %s1373_s15, %s1283_s8  ;;  %p1289_p13 = scmp.lt.s32.totalorder %s1283_s8, %s1283_s8 }
  0x1d   :  { %p1290_p0 = por %p1289_p13, %p1288_p12 }
  0x1f   :  { %p1291_p1 = pnand %p1290_p0, %p1284_p11 }
  0x21   :  { %1294 = shalt.err (!%p1291_p1)
}
  0x22   :  { %22 = dma.hbm_to_vmem [thread:$0]  %s1440_s0, 1536, %s1373_s15, [#allocation3], %s1347_s24, %s1347_s24, %s1348_s25  }
  0x23   :  { %s1349_s10 = smov [#allocation7]   ;;  %s1295_s14 = scalar_lea.hbm %s1442_s2, 8192 }
  0x24   :  { %s40_s11 = sshll.u32 %s1349_s10, 4  ;;  %p1296_p2 = scmp.ne.s32.totalorder %s1442_s2, %s1295_s14  ;;  %s41_s11 = int_to_ptr.vmem [resolvable:$true] %s40_s11 }
  0x25   :  { %p1299_p3 = scmp.lt.u32.totalorder %s1295_s14, %s1442_s2 }
  0x27   :  { %p1301_p4 = pnand %p1299_p3, %p1296_p2 }
  0x29   :  { %1304 = shalt.err (!%p1301_p4)
}
  0x2a   :  { %s1305_s20 = scalar_lea.vmem %s41_s11, 8192  ;;  %p1310_p6 = scmp.lt.s32.totalorder %s41_s11, %s41_s11 }
  0x2b   :  { %p1306_p5 = scmp.ne.s32.totalorder %s41_s11, %s1305_s20  ;;  %p1311_p7 = scmp.lt.s32.totalorder %s1305_s20, %s1305_s20 }
  0x2d   :  { %p1312_p8 = por %p1311_p7, %p1310_p6 }
  0x2f   :  { %p1313_p9 = pnand %p1312_p8, %p1306_p5 }
  0x31   :  { %1316 = shalt.err (!%p1313_p9)
}
  0x32   :  { %s1350_s0 = smov 128   ;;  %s1351_s15 = smov 8  }
  0x33   :  { %46 = dma.hbm_to_vmem [thread:$0]  %s1442_s2, 8192, %s41_s11, [#allocation6], %s1350_s0, %s1350_s0, %s1351_s15  }
  0x34   :  { %1339 = dma.done.wait [#allocation3], 1536  }
  0x35   :  { %1340 = vsyncadd [#allocation3], 4294965760 }
  0x36   :  { %1341 = dma.done.wait [#allocation6], 33792  }
  0x37   :  { %1342 = vsyncadd [#allocation6], 4294933504  ;;  %v69_v0 = vld [vmem:[#allocation5 + $0x8] sm:$0xff]  ;;  %v71_v2 = vld [vmem:[#allocation5 + $0x18] sm:$0xff]  ;;  %vm268_vm0 = vcmask 130048   ;;  %s1352_s2 = smov [#allocation8]  }
  0x38   :  { %v73_v1 = vld [vmem:[#allocation5 + $0x28] sm:$0xff]  ;;  %v75_v4 = vld [vmem:[#allocation5 + $0x38] sm:$0xff]  ;;  %v68_v5 = vld [vmem:[#allocation5] sm:$0xff]  ;;  %s860_s23 = sshll.u32 %s1352_s2, 4  ;;  %s861_s23 = int_to_ptr.vmem [resolvable:$true] %s860_s23 }
  0x39   :  { %v961_v3 = vpack.c.bf16 %v73_v1, %v69_v0  ;;  %v72_v6 = vld [vmem:[#allocation5 + $0x20] sm:$0xff]  ;;  %v1061_v7 = vpack.c.bf16 %v75_v4, %v71_v2  ;;  %v70_v9 = vld [vmem:[#allocation5 + $0x10] sm:$0xff]  ;;  %v77_v11 = vld [vmem:[#allocation5 + $0x48] sm:$0xff]  ;;  %s1317_s24 = scalar_lea.vmem %s861_s23, 384  ;;  %p1322_p11 = scmp.lt.s32.totalorder %s861_s23, %s861_s23 }
  0x3a   :  { %v963_v8 = vpack.c.bf16 %v72_v6, %v68_v5  ;;  %v74_v10 = vld [vmem:[#allocation5 + $0x30] sm:$0xff]  ;;  %v81_v13 = vld [vmem:[#allocation5 + $0x68] sm:$0xff]  ;;  %v79_v14 = vld [vmem:[#allocation5 + $0x58] sm:$0xff]  ;;  %p1318_p10 = scmp.ne.s32.totalorder %s861_s23, %s1317_s24  ;;  %p1323_p12 = scmp.lt.s32.totalorder %s1317_s24, %s1317_s24 }
  0x3b   :  { %962 = vmatprep.subr.bf16.mxu0 %v961_v3  ;;  %v1063_v12 = vpack.c.bf16 %v74_v10, %v70_v9  ;;  %v83_v15 = vld [vmem:[#allocation5 + $0x78] sm:$0xff]  ;;  %1062 = vmatprep.subr.bf16.mxu1 %v1061_v7  ;;  %v965_v16 = vpack.c.bf16 %v81_v13, %v77_v11  ;;  %v76_v18 = vld [vmem:[#allocation5 + $0x40] sm:$0xff]  ;;  %v78_v20 = vld [vmem:[#allocation5 + $0x50] sm:$0xff] }
  0x3c   :  { %964 = vmatpush1.bf16.msra.mxu0 %v963_v8  ;;  %v1065_v17 = vpack.c.bf16 %v83_v15, %v79_v14  ;;  %v80_v19 = vld [vmem:[#allocation5 + $0x60] sm:$0xff]  ;;  %v82_v22 = vld [vmem:[#allocation5 + $0x70] sm:$0xff]  ;;  %v85_v23 = vld [vmem:[#allocation5 + $0x88] sm:$0xff]  ;;  %p1324_p13 = por %p1323_p12, %p1322_p11 }
  0x3d   :  { %1064 = vmatpush1.bf16.msra.mxu1 %v1063_v12  ;;  %v967_v21 = vpack.c.bf16 %v80_v19, %v76_v18  ;;  %v89_v24 = vld [vmem:[#allocation5 + $0xa8] sm:$0xff]  ;;  %966 = vmatprep.subr.bf16.mxu0 %v965_v16  ;;  %v1067_v25 = vpack.c.bf16 %v82_v22, %v78_v20  ;;  %v87_v27 = vld [vmem:[#allocation5 + $0x98] sm:$0xff]  ;;  %v84_v29 = vld [vmem:[#allocation5 + $0x80] sm:$0xff] }
  0x3e   :  { %1066 = vmatprep.subr.bf16.mxu1 %v1065_v17  ;;  %v969_v26 = vpack.c.bf16 %v89_v24, %v85_v23  ;;  %v91_v28 = vld [vmem:[#allocation5 + $0xb8] sm:$0xff]  ;;  %v88_v31 = vld [vmem:[#allocation5 + $0xa0] sm:$0xff]  ;;  %v86_v32 = vld [vmem:[#allocation5 + $0x90] sm:$0xff]  ;;  %p1325_p0 = pnand %p1324_p13, %p1318_p10 }
  0x3f   :  { %v1069_v30 = vpack.c.bf16 %v91_v28, %v87_v27  ;;  %v90_v33 = vld [vmem:[#allocation5 + $0xb0] sm:$0xff]  ;;  %v971_v34 = vpack.c.bf16 %v88_v31, %v84_v29  ;;  %v93_v35 = vld [vmem:[#allocation5 + $0xc8] sm:$0xff]  ;;  %v95_v37 = vld [vmem:[#allocation5 + $0xd8] sm:$0xff] }
  0x40   :  { %968 = vmatpush1.bf16.msra.mxu0 %v967_v21  ;;  %v97_v36 = vld [vmem:[#allocation5 + $0xe8] sm:$0xff]  ;;  %v1071_v38 = vpack.c.bf16 %v90_v33, %v86_v32  ;;  %v99_v40 = vld [vmem:[#allocation5 + $0xf8] sm:$0xff]  ;;  %v92_v41 = vld [vmem:[#allocation5 + $0xc0] sm:$0xff] }
  0x41   :  { %1068 = vmatpush1.bf16.msra.mxu1 %v1067_v25  ;;  %970 = vmatprep.subr.bf16.mxu0 %v969_v26  ;;  %v973_v39 = vpack.c.bf16 %v97_v36, %v93_v35  ;;  %v96_v42 = vld [vmem:[#allocation5 + $0xe0] sm:$0xff]  ;;  %v1073_v43 = vpack.c.bf16 %v99_v40, %v95_v37  ;;  %v94_v44 = vld [vmem:[#allocation5 + $0xd0] sm:$0xff]  ;;  %v101_v46 = vld [vmem:[#allocation5 + $0x108] sm:$0xff] }
  0x42   :  { %1070 = vmatprep.subr.bf16.mxu1 %v1069_v30  ;;  %v98_v45 = vld [vmem:[#allocation5 + $0xf0] sm:$0xff]  ;;  %v105_v47 = vld [vmem:[#allocation5 + $0x128] sm:$0xff]  ;;  %v103_v48 = vld [vmem:[#allocation5 + $0x118] sm:$0xff]  ;;  %v975_v50 = vpack.c.bf16 %v96_v42, %v92_v41 }
  0x43   :  { %v107_v49 = vld [vmem:[#allocation5 + $0x138] sm:$0xff]  ;;  %v1075_v51 = vpack.c.bf16 %v98_v45, %v94_v44  ;;  %v977_v52 = vpack.c.bf16 %v105_v47, %v101_v46  ;;  %v100_v53 = vld [vmem:[#allocation5 + $0x100] sm:$0xff]  ;;  %v102_v55 = vld [vmem:[#allocation5 + $0x110] sm:$0xff] }
  0x44   :  { %972 = vmatpush1.bf16.msra.mxu0 %v971_v34  ;;  %v104_v54 = vld [vmem:[#allocation5 + $0x120] sm:$0xff]  ;;  %v1077_v56 = vpack.c.bf16 %v107_v49, %v103_v48  ;;  %v106_v57 = vld [vmem:[#allocation5 + $0x130] sm:$0xff]  ;;  %v109_v58 = vld [vmem:[#allocation5 + $0x148] sm:$0xff] }
  0x45   :  { %1072 = vmatpush1.bf16.msra.mxu1 %v1071_v38  ;;  %974 = vmatprep.subr.bf16.mxu0 %v973_v39  ;;  %v113_v59 = vld [vmem:[#allocation5 + $0x168] sm:$0xff]  ;;  %v111_v60 = vld [vmem:[#allocation5 + $0x158] sm:$0xff]  ;;  %v979_v62 = vpack.c.bf16 %v104_v54, %v100_v53  ;;  %v1079_v63 = vpack.c.bf16 %v106_v57, %v102_v55  ;;  %v108_v1 = vld [vmem:[#allocation5 + $0x140] sm:$0xff] }
  0x46   :  { %1074 = vmatprep.subr.bf16.mxu1 %v1073_v43  ;;  %v115_v61 = vld [vmem:[#allocation5 + $0x178] sm:$0xff]  ;;  %v981_v0 = vpack.c.bf16 %v113_v59, %v109_v58  ;;  %v112_v2 = vld [vmem:[#allocation5 + $0x160] sm:$0xff]  ;;  %v110_v3 = vld [vmem:[#allocation5 + $0x150] sm:$0xff] }
  0x47   :  { %v1081_v4 = vpack.c.bf16 %v115_v61, %v111_v60  ;;  %v114_v5 = vld [vmem:[#allocation5 + $0x170] sm:$0xff]  ;;  %v117_v6 = vld [vmem:[#allocation5 + $0x188] sm:$0xff]  ;;  %v119_v8 = vld [vmem:[#allocation5 + $0x198] sm:$0xff]  ;;  %v983_v10 = vpack.c.bf16 %v112_v2, %v108_v1 }
  0x48   :  { %976 = vmatpush1.bf16.msra.mxu0 %v975_v50  ;;  %v121_v7 = vld [vmem:[#allocation5 + $0x1a8] sm:$0xff]  ;;  %v123_v9 = vld [vmem:[#allocation5 + $0x1b8] sm:$0xff]  ;;  %v1083_v11 = vpack.c.bf16 %v114_v5, %v110_v3  ;;  %v116_v13 = vld [vmem:[#allocation5 + $0x180] sm:$0xff] }
  0x49   :  { %1076 = vmatpush1.bf16.msra.mxu1 %v1075_v51  ;;  %978 = vmatprep.subr.bf16.mxu0 %v977_v52  ;;  %v985_v12 = vpack.c.bf16 %v121_v7, %v117_v6  ;;  %v120_v14 = vld [vmem:[#allocation5 + $0x1a0] sm:$0xff]  ;;  %v118_v15 = vld [vmem:[#allocation5 + $0x190] sm:$0xff]  ;;  %v1085_v16 = vpack.c.bf16 %v123_v9, %v119_v8  ;;  %v125_v18 = vld [vmem:[#allocation5 + $0x1c8] sm:$0xff] }
  0x4a   :  { %1078 = vmatprep.subr.bf16.mxu1 %v1077_v56  ;;  %v122_v17 = vld [vmem:[#allocation5 + $0x1b0] sm:$0xff]  ;;  %v129_v19 = vld [vmem:[#allocation5 + $0x1e8] sm:$0xff]  ;;  %v127_v20 = vld [vmem:[#allocation5 + $0x1d8] sm:$0xff]  ;;  %v987_v22 = vpack.c.bf16 %v120_v14, %v116_v13 }
  0x4b   :  { %v131_v21 = vld [vmem:[#allocation5 + $0x1f8] sm:$0xff]  ;;  %v1087_v23 = vpack.c.bf16 %v122_v17, %v118_v15  ;;  %v989_v24 = vpack.c.bf16 %v129_v19, %v125_v18  ;;  %v124_v25 = vld [vmem:[#allocation5 + $0x1c0] sm:$0xff]  ;;  %v126_v27 = vld [vmem:[#allocation5 + $0x1d0] sm:$0xff] }
  0x4c   :  { %980 = vmatpush1.bf16.msra.mxu0 %v979_v62  ;;  %v128_v26 = vld [vmem:[#allocation5 + $0x1e0] sm:$0xff]  ;;  %v1089_v28 = vpack.c.bf16 %v131_v21, %v127_v20  ;;  %v130_v29 = vld [vmem:[#allocation5 + $0x1f0] sm:$0xff]  ;;  %v133_v30 = vld [vmem:[#allocation5 + $0x208] sm:$0xff] }
  0x4d   :  { %1080 = vmatpush1.bf16.msra.mxu1 %v1079_v63  ;;  %982 = vmatprep.subr.bf16.mxu0 %v981_v0  ;;  %v137_v31 = vld [vmem:[#allocation5 + $0x228] sm:$0xff]  ;;  %v135_v32 = vld [vmem:[#allocation5 + $0x218] sm:$0xff]  ;;  %v991_v34 = vpack.c.bf16 %v128_v26, %v124_v25  ;;  %v1091_v35 = vpack.c.bf16 %v130_v29, %v126_v27  ;;  %v132_v37 = vld [vmem:[#allocation5 + $0x200] sm:$0xff] }
  0x4e   :  { %1082 = vmatprep.subr.bf16.mxu1 %v1081_v4  ;;  %v139_v33 = vld [vmem:[#allocation5 + $0x238] sm:$0xff]  ;;  %v993_v36 = vpack.c.bf16 %v137_v31, %v133_v30  ;;  %v136_v38 = vld [vmem:[#allocation5 + $0x220] sm:$0xff]  ;;  %v134_v39 = vld [vmem:[#allocation5 + $0x210] sm:$0xff] }
  0x4f   :  { %v1093_v40 = vpack.c.bf16 %v139_v33, %v135_v32  ;;  %v138_v41 = vld [vmem:[#allocation5 + $0x230] sm:$0xff]  ;;  %v141_v42 = vld [vmem:[#allocation5 + $0x248] sm:$0xff]  ;;  %v143_v44 = vld [vmem:[#allocation5 + $0x258] sm:$0xff]  ;;  %v995_v46 = vpack.c.bf16 %v136_v38, %v132_v37 }
  0x50   :  { %984 = vmatpush1.bf16.msra.mxu0 %v983_v10  ;;  %v145_v43 = vld [vmem:[#allocation5 + $0x268] sm:$0xff]  ;;  %v147_v45 = vld [vmem:[#allocation5 + $0x278] sm:$0xff]  ;;  %v1095_v47 = vpack.c.bf16 %v138_v41, %v134_v39  ;;  %v140_v49 = vld [vmem:[#allocation5 + $0x240] sm:$0xff] }
  0x51   :  { %1084 = vmatpush1.bf16.msra.mxu1 %v1083_v11  ;;  %986 = vmatprep.subr.bf16.mxu0 %v985_v12  ;;  %v997_v48 = vpack.c.bf16 %v145_v43, %v141_v42  ;;  %v144_v50 = vld [vmem:[#allocation5 + $0x260] sm:$0xff]  ;;  %v142_v51 = vld [vmem:[#allocation5 + $0x250] sm:$0xff]  ;;  %v1097_v52 = vpack.c.bf16 %v147_v45, %v143_v44  ;;  %v149_v54 = vld [vmem:[#allocation5 + $0x288] sm:$0xff] }
  0x52   :  { %1086 = vmatprep.subr.bf16.mxu1 %v1085_v16  ;;  %v146_v53 = vld [vmem:[#allocation5 + $0x270] sm:$0xff]  ;;  %v153_v55 = vld [vmem:[#allocation5 + $0x2a8] sm:$0xff]  ;;  %v151_v56 = vld [vmem:[#allocation5 + $0x298] sm:$0xff]  ;;  %v999_v58 = vpack.c.bf16 %v144_v50, %v140_v49 }
  0x53   :  { %v155_v57 = vld [vmem:[#allocation5 + $0x2b8] sm:$0xff]  ;;  %v1099_v59 = vpack.c.bf16 %v146_v53, %v142_v51  ;;  %v1001_v60 = vpack.c.bf16 %v153_v55, %v149_v54  ;;  %v148_v61 = vld [vmem:[#allocation5 + $0x280] sm:$0xff]  ;;  %v150_v63 = vld [vmem:[#allocation5 + $0x290] sm:$0xff] }
  0x54   :  { %988 = vmatpush1.bf16.msra.mxu0 %v987_v22  ;;  %v152_v62 = vld [vmem:[#allocation5 + $0x2a0] sm:$0xff]  ;;  %v1101_v0 = vpack.c.bf16 %v155_v57, %v151_v56  ;;  %v154_v1 = vld [vmem:[#allocation5 + $0x2b0] sm:$0xff]  ;;  %v157_v2 = vld [vmem:[#allocation5 + $0x2c8] sm:$0xff] }
  0x55   :  { %1088 = vmatpush1.bf16.msra.mxu1 %v1087_v23  ;;  %990 = vmatprep.subr.bf16.mxu0 %v989_v24  ;;  %v161_v3 = vld [vmem:[#allocation5 + $0x2e8] sm:$0xff]  ;;  %v159_v4 = vld [vmem:[#allocation5 + $0x2d8] sm:$0xff]  ;;  %v1003_v6 = vpack.c.bf16 %v152_v62, %v148_v61  ;;  %v156_v7 = vld [vmem:[#allocation5 + $0x2c0] sm:$0xff]  ;;  %v1103_v8 = vpack.c.bf16 %v154_v1, %v150_v63 }
  0x56   :  { %1090 = vmatprep.subr.bf16.mxu1 %v1089_v28  ;;  %v163_v5 = vld [vmem:[#allocation5 + $0x2f8] sm:$0xff]  ;;  %v1005_v9 = vpack.c.bf16 %v161_v3, %v157_v2  ;;  %v160_v10 = vld [vmem:[#allocation5 + $0x2e0] sm:$0xff]  ;;  %v158_v11 = vld [vmem:[#allocation5 + $0x2d0] sm:$0xff] }
  0x57   :  { %v162_v12 = vld [vmem:[#allocation5 + $0x2f0] sm:$0xff]  ;;  %v1105_v13 = vpack.c.bf16 %v163_v5, %v159_v4  ;;  %v165_v14 = vld [vmem:[#allocation5 + $0x308] sm:$0xff]  ;;  %v167_v17 = vld [vmem:[#allocation5 + $0x318] sm:$0xff]  ;;  %v1007_v19 = vpack.c.bf16 %v160_v10, %v156_v7 }
  0x58   :  { %992 = vmatpush1.bf16.msra.mxu0 %v991_v34  ;;  %v169_v15 = vld [vmem:[#allocation5 + $0x328] sm:$0xff]  ;;  %v171_v18 = vld [vmem:[#allocation5 + $0x338] sm:$0xff]  ;;  %v1107_v20 = vpack.c.bf16 %v162_v12, %v158_v11  ;;  %v164_v22 = vld [vmem:[#allocation5 + $0x300] sm:$0xff] }
  0x59   :  { %1092 = vmatpush1.bf16.msra.mxu1 %v1091_v35  ;;  %994 = vmatprep.subr.bf16.mxu0 %v993_v36  ;;  %v57_v16 = vld [vmem:[#allocation2 + $0x8] sm:$0xff]  ;;  %v1009_v21 = vpack.c.bf16 %v169_v15, %v165_v14  ;;  %v168_v23 = vld [vmem:[#allocation5 + $0x320] sm:$0xff]  ;;  %v166_v24 = vld [vmem:[#allocation5 + $0x310] sm:$0xff]  ;;  %v1109_v25 = vpack.c.bf16 %v171_v18, %v167_v17 }
  0x5a   :  { %1094 = vmatprep.subr.bf16.mxu1 %v1093_v40  ;;  %342 = vmatprep.mubr.f32.mxu0 %v57_v16  ;;  %v170_v26 = vld [vmem:[#allocation5 + $0x330] sm:$0xff]  ;;  %v173_v27 = vld [vmem:[#allocation5 + $0x348] sm:$0xff]  ;;  %v175_v29 = vld [vmem:[#allocation5 + $0x358] sm:$0xff]  ;;  %v1011_v31 = vpack.c.bf16 %v168_v23, %v164_v22 }
  0x5b   :  { %508 = vmatprep.mubr.f32.mxu1 %v57_v16  ;;  %v177_v28 = vld [vmem:[#allocation5 + $0x368] sm:$0xff]  ;;  %v179_v30 = vld [vmem:[#allocation5 + $0x378] sm:$0xff]  ;;  %v1111_v32 = vpack.c.bf16 %v170_v26, %v166_v24  ;;  %v172_v34 = vld [vmem:[#allocation5 + $0x340] sm:$0xff] }
  0x5c   :  { %996 = vmatpush1.bf16.msra.mxu0 %v995_v46  ;;  %v1013_v33 = vpack.c.bf16 %v177_v28, %v173_v27  ;;  %v176_v35 = vld [vmem:[#allocation5 + $0x360] sm:$0xff]  ;;  %v174_v36 = vld [vmem:[#allocation5 + $0x350] sm:$0xff]  ;;  %v1113_v37 = vpack.c.bf16 %v179_v30, %v175_v29  ;;  %v181_v39 = vld [vmem:[#allocation5 + $0x388] sm:$0xff] }
  0x5d   :  { %1096 = vmatpush1.bf16.msra.mxu1 %v1095_v47  ;;  %998 = vmatprep.subr.bf16.mxu0 %v997_v48  ;;  %v178_v38 = vld [vmem:[#allocation5 + $0x370] sm:$0xff]  ;;  %v185_v40 = vld [vmem:[#allocation5 + $0x3a8] sm:$0xff]  ;;  %v183_v41 = vld [vmem:[#allocation5 + $0x398] sm:$0xff]  ;;  %v1015_v43 = vpack.c.bf16 %v176_v35, %v172_v34 }
  0x5e   :  { %1098 = vmatprep.subr.bf16.mxu1 %v1097_v52  ;;  %v187_v42 = vld [vmem:[#allocation5 + $0x3b8] sm:$0xff]  ;;  %v1115_v44 = vpack.c.bf16 %v178_v38, %v174_v36  ;;  %v1017_v45 = vpack.c.bf16 %v185_v40, %v181_v39  ;;  %v180_v46 = vld [vmem:[#allocation5 + $0x380] sm:$0xff]  ;;  %v182_v48 = vld [vmem:[#allocation5 + $0x390] sm:$0xff] }
  0x5f   :  { %v184_v47 = vld [vmem:[#allocation5 + $0x3a0] sm:$0xff]  ;;  %v1117_v49 = vpack.c.bf16 %v187_v42, %v183_v41  ;;  %v186_v50 = vld [vmem:[#allocation5 + $0x3b0] sm:$0xff]  ;;  %v189_v51 = vld [vmem:[#allocation5 + $0x3c8] sm:$0xff] }
  0x60   :  { %1000 = vmatpush1.bf16.msra.mxu0 %v999_v58  ;;  %v193_v52 = vld [vmem:[#allocation5 + $0x3e8] sm:$0xff]  ;;  %v191_v53 = vld [vmem:[#allocation5 + $0x3d8] sm:$0xff]  ;;  %v1019_v55 = vpack.c.bf16 %v184_v47, %v180_v46  ;;  %v1119_v56 = vpack.c.bf16 %v186_v50, %v182_v48  ;;  %v188_v58 = vld [vmem:[#allocation5 + $0x3c0] sm:$0xff] }
  0x61   :  { %1100 = vmatpush1.bf16.msra.mxu1 %v1099_v59  ;;  %1002 = vmatprep.subr.bf16.mxu0 %v1001_v60  ;;  %v195_v54 = vld [vmem:[#allocation5 + $0x3f8] sm:$0xff]  ;;  %v1021_v57 = vpack.c.bf16 %v193_v52, %v189_v51  ;;  %v192_v59 = vld [vmem:[#allocation5 + $0x3e0] sm:$0xff]  ;;  %v190_v60 = vld [vmem:[#allocation5 + $0x3d0] sm:$0xff] }
  0x62   :  { %1102 = vmatprep.subr.bf16.mxu1 %v1101_v0  ;;  %v1121_v61 = vpack.c.bf16 %v195_v54, %v191_v53  ;;  %v194_v62 = vld [vmem:[#allocation5 + $0x3f0] sm:$0xff]  ;;  %v197_v63 = vld [vmem:[#allocation5 + $0x408] sm:$0xff]  ;;  %v199_v1 = vld [vmem:[#allocation5 + $0x418] sm:$0xff]  ;;  %v1023_v3 = vpack.c.bf16 %v192_v59, %v188_v58 }
  0x63   :  { %v201_v0 = vld [vmem:[#allocation5 + $0x428] sm:$0xff]  ;;  %v203_v2 = vld [vmem:[#allocation5 + $0x438] sm:$0xff]  ;;  %v1123_v4 = vpack.c.bf16 %v194_v62, %v190_v60  ;;  %v200_v7 = vld [vmem:[#allocation5 + $0x420] sm:$0xff] }
  0x64   :  { %1004 = vmatpush1.bf16.msra.mxu0 %v1003_v6  ;;  %v1025_v5 = vpack.c.bf16 %v201_v0, %v197_v63  ;;  %v196_v6 = vld [vmem:[#allocation5 + $0x400] sm:$0xff]  ;;  %v202_v10 = vld [vmem:[#allocation5 + $0x430] sm:$0xff]  ;;  %v205_v11 = vld [vmem:[#allocation5 + $0x448] sm:$0xff] }
  0x65   :  { %1104 = vmatpush1.bf16.msra.mxu1 %v1103_v8  ;;  %1006 = vmatprep.subr.bf16.mxu0 %v1005_v9  ;;  %v198_v8 = vld [vmem:[#allocation5 + $0x410] sm:$0xff]  ;;  %v1125_v9 = vpack.c.bf16 %v203_v2, %v199_v1  ;;  %v209_v12 = vld [vmem:[#allocation5 + $0x468] sm:$0xff]  ;;  %v211_v14 = vld [vmem:[#allocation5 + $0x478] sm:$0xff]  ;;  %v1027_v16 = vpack.c.bf16 %v200_v7, %v196_v6 }
  0x66   :  { %1106 = vmatprep.subr.bf16.mxu1 %v1105_v13  ;;  %v207_v13 = vld [vmem:[#allocation5 + $0x458] sm:$0xff]  ;;  %v56_v15 = vld [vmem:[#allocation2] sm:$0xff]  ;;  %v1127_v17 = vpack.c.bf16 %v202_v10, %v198_v8  ;;  %v1029_v18 = vpack.c.bf16 %v209_v12, %v205_v11  ;;  %v210_v23 = vld [vmem:[#allocation5 + $0x470] sm:$0xff] }
  0x67   :  { %v1129_v22 = vpack.c.bf16 %v211_v14, %v207_v13  ;;  %v213_v24 = vld [vmem:[#allocation5 + $0x488] sm:$0xff]  ;;  %v215_v26 = vld [vmem:[#allocation5 + $0x498] sm:$0xff]  ;;  %v60_v30 = vld [vmem:[#allocation2 + $0x20] sm:$0xff] }
  0x68   :  { %1008 = vmatpush1.bf16.msra.mxu0 %v1007_v19  ;;  %v204_v19 = vld [vmem:[#allocation5 + $0x440] sm:$0xff]  ;;  %v219_v27 = vld [vmem:[#allocation5 + $0x4b8] sm:$0xff]  ;;  %v61_v28 = vld [vmem:[#allocation2 + $0x28] sm:$0xff] }
  0x69   :  { %1108 = vmatpush1.bf16.msra.mxu1 %v1107_v20  ;;  %1010 = vmatprep.subr.bf16.mxu0 %v1009_v21  ;;  %v208_v20 = vld [vmem:[#allocation5 + $0x460] sm:$0xff]  ;;  %v206_v21 = vld [vmem:[#allocation5 + $0x450] sm:$0xff]  ;;  %v1133_v36 = vpack.c.bf16 %v219_v27, %v215_v26  ;;  %v221_v38 = vld [vmem:[#allocation5 + $0x4c8] sm:$0xff] }
  0x6a   :  { %1110 = vmatprep.subr.bf16.mxu1 %v1109_v25  ;;  %v217_v25 = vld [vmem:[#allocation5 + $0x4a8] sm:$0xff]  ;;  %v1031_v29 = vpack.c.bf16 %v208_v20, %v204_v19  ;;  %v216_v34 = vld [vmem:[#allocation5 + $0x4a0] sm:$0xff]  ;;  %v214_v35 = vld [vmem:[#allocation5 + $0x490] sm:$0xff] }
  0x6b   :  { %v225_v39 = vld [vmem:[#allocation5 + $0x4e8] sm:$0xff]  ;;  %v223_v40 = vld [vmem:[#allocation5 + $0x4d8] sm:$0xff]  ;;  %v220_v47 = vld [vmem:[#allocation5 + $0x4c0] sm:$0xff] }
  0x6c   :  { %1012 = vmatpush1.bf16.msra.mxu0 %v1011_v31  ;;  %v1131_v31 = vpack.c.bf16 %v210_v23, %v206_v21  ;;  %v227_v41 = vld [vmem:[#allocation5 + $0x4f8] sm:$0xff]  ;;  %v65_v42 = vld [vmem:[#allocation2 + $0x48] sm:$0xff]  ;;  %v1037_v46 = vpack.c.bf16 %v225_v39, %v221_v38  ;;  %v224_v48 = vld [vmem:[#allocation5 + $0x4e0] sm:$0xff] }
  0x6d   :  { %1112 = vmatpush1.bf16.msra.mxu1 %v1111_v32  ;;  %1014 = vmatprep.subr.bf16.mxu0 %v1013_v33  ;;  %v1033_v32 = vpack.c.bf16 %v217_v25, %v213_v24  ;;  %v212_v33 = vld [vmem:[#allocation5 + $0x480] sm:$0xff]  ;;  %v1137_v50 = vpack.c.bf16 %v227_v41, %v223_v40  ;;  %v226_v51 = vld [vmem:[#allocation5 + $0x4f0] sm:$0xff]  ;;  %v229_v52 = vld [vmem:[#allocation5 + $0x508] sm:$0xff] }
  0x6e   :  { %1114 = vmatprep.subr.bf16.mxu1 %v1113_v37  ;;  %v218_v37 = vld [vmem:[#allocation5 + $0x4b0] sm:$0xff]  ;;  %v233_v53 = vld [vmem:[#allocation5 + $0x528] sm:$0xff]  ;;  %v231_v54 = vld [vmem:[#allocation5 + $0x518] sm:$0xff] }
  0x6f   :  { %v1041_v59 = vpack.c.bf16 %v233_v53, %v229_v52  ;;  %v228_v60 = vld [vmem:[#allocation5 + $0x500] sm:$0xff]  ;;  %v230_v62 = vld [vmem:[#allocation5 + $0x510] sm:$0xff]  ;;  %v237_v1 = vld [vmem:[#allocation5 + $0x548] sm:$0xff] }
  0x70   :  { %1016 = vmatpush1.bf16.msra.mxu0 %v1015_v43  ;;  %v1035_v43 = vpack.c.bf16 %v216_v34, %v212_v33  ;;  %v234_v0 = vld [vmem:[#allocation5 + $0x530] sm:$0xff]  ;;  %v241_v2 = vld [vmem:[#allocation5 + $0x568] sm:$0xff]  ;;  %v236_v8 = vld [vmem:[#allocation5 + $0x540] sm:$0xff] }
  0x71   :  { %1116 = vmatpush1.bf16.msra.mxu1 %v1115_v44  ;;  %1018 = vmatprep.subr.bf16.mxu0 %v1017_v45  ;;  %v64_v44 = vld [vmem:[#allocation2 + $0x40] sm:$0xff]  ;;  %v1135_v45 = vpack.c.bf16 %v218_v37, %v214_v35  ;;  %v1143_v6 = vpack.c.bf16 %v234_v0, %v230_v62  ;;  %v1045_v7 = vpack.c.bf16 %v241_v2, %v237_v1  ;;  %v238_v10 = vld [vmem:[#allocation5 + $0x550] sm:$0xff]  ;;  %v245_v13 = vld [vmem:[#allocation5 + $0x588] sm:$0xff] }
  0x72   :  { %1118 = vmatprep.subr.bf16.mxu1 %v1117_v49  ;;  %v222_v49 = vld [vmem:[#allocation5 + $0x4d0] sm:$0xff]  ;;  %v249_v14 = vld [vmem:[#allocation5 + $0x5a8] sm:$0xff]  ;;  %v244_v20 = vld [vmem:[#allocation5 + $0x580] sm:$0xff] }
  0x73   :  { %v1139_v58 = vpack.c.bf16 %v226_v51, %v222_v49  ;;  %v242_v12 = vld [vmem:[#allocation5 + $0x570] sm:$0xff]  ;;  %v1049_v19 = vpack.c.bf16 %v249_v14, %v245_v13  ;;  %v248_v21 = vld [vmem:[#allocation5 + $0x5a0] sm:$0xff]  ;;  %v253_v25 = vld [vmem:[#allocation5 + $0x5c8] sm:$0xff] }
  0x74   :  { %1020 = vmatpush1.bf16.msra.mxu0 %v1019_v55  ;;  %v235_v55 = vld [vmem:[#allocation5 + $0x538] sm:$0xff]  ;;  %v250_v24 = vld [vmem:[#allocation5 + $0x5b0] sm:$0xff]  ;;  %v257_v26 = vld [vmem:[#allocation5 + $0x5e8] sm:$0xff] }
  0x75   :  { %1120 = vmatpush1.bf16.msra.mxu1 %v1119_v56  ;;  %1022 = vmatprep.subr.bf16.mxu0 %v1021_v57  ;;  %v59_v56 = vld [vmem:[#allocation2 + $0x18] sm:$0xff]  ;;  %v1039_v57 = vpack.c.bf16 %v224_v48, %v220_v47  ;;  %v1141_v63 = vpack.c.bf16 %v235_v55, %v231_v54  ;;  %v256_v33 = vld [vmem:[#allocation5 + $0x5e0] sm:$0xff]  ;;  %v254_v34 = vld [vmem:[#allocation5 + $0x5d0] sm:$0xff] }
  0x76   :  { %1122 = vmatprep.subr.bf16.mxu1 %v1121_v61  ;;  %v232_v61 = vld [vmem:[#allocation5 + $0x520] sm:$0xff]  ;;  %v255_v27 = vld [vmem:[#allocation5 + $0x5d8] sm:$0xff]  ;;  %v261_v37 = vld [vmem:[#allocation5 + $0x608] sm:$0xff] }
  0x77   :  { %v265_v38 = vld [vmem:[#allocation5 + $0x628] sm:$0xff]  ;;  %v263_v39 = vld [vmem:[#allocation5 + $0x618] sm:$0xff]  ;;  %v266_v48 = vld [vmem:[#allocation5 + $0x630] sm:$0xff] }
  0x78   :  { %1024 = vmatpush1.bf16.msra.mxu0 %v1023_v3  ;;  %v239_v3 = vld [vmem:[#allocation5 + $0x558] sm:$0xff]  ;;  %v638_v49 = vld [vmem:[#allocation7 + $0x80] sm:$0xff]  ;;  %v671_v52 = vld [vmem:[#allocation7 + $0x188] sm:$0xff] }
  0x79   :  { %1124 = vmatpush1.bf16.msra.mxu1 %v1123_v4  ;;  %1026 = vmatprep.subr.bf16.mxu0 %v1025_v5  ;;  %v243_v4 = vld [vmem:[#allocation5 + $0x578] sm:$0xff]  ;;  %v1043_v5 = vpack.c.bf16 %v232_v61, %v228_v60  ;;  %v670_v51 = vld [vmem:[#allocation7 + $0x180] sm:$0xff]  ;;  %v655_v60 = vld [vmem:[#allocation7 + $0x108] sm:$0xff] }
  0x7a   :  { %1126 = vmatprep.subr.bf16.mxu1 %v1125_v9  ;;  %v240_v9 = vld [vmem:[#allocation5 + $0x560] sm:$0xff]  ;;  %v1145_v11 = vpack.c.bf16 %v243_v4, %v239_v3  ;;  %v267_v40 = vld [vmem:[#allocation5 + $0x638] sm:$0xff]  ;;  %v640_v61 = vld [vmem:[#allocation7 + $0x90] sm:$0xff] }
  0x7b   :  { %343 = vmatmul.mubr.f32.vlgmr.msra.gmra.mrb[0].mxu0 %v56_v15  ;;  %v1157_v47 = vpack.c.bf16 %v267_v40, %v263_v39  ;;  %v641_v62 = vld [vmem:[#allocation7 + $0x98] sm:$0xff]  ;;  %v672_v0 = vld [vmem:[#allocation7 + $0x190] sm:$0xff]  ;;  %v674_v14 = vld [vmem:[#allocation7 + $0x1a0] sm:$0xff] }
  0x7c   :  { %1028 = vmatpush1.bf16.msra.mxu0 %v1027_v16  ;;  %509 = vmatmul.mubr.f32.vlgmr.msra.gmra.mrb[0].mxu1 %v56_v15  ;;  %v247_v15 = vld [vmem:[#allocation5 + $0x598] sm:$0xff]  ;;  %v62_v13 = vld [vmem:[#allocation2 + $0x30] sm:$0xff]  ;;  %v647_v39 = vld [vmem:[#allocation7 + $0xc8] sm:$0xff] }
  0x7d   :  { %1128 = vmatpush1.bf16.msra.mxu1 %v1127_v17  ;;  %1030 = vmatprep.subr.bf16.mxu0 %v1029_v18  ;;  %v251_v16 = vld [vmem:[#allocation5 + $0x5b8] sm:$0xff]  ;;  %v1047_v17 = vpack.c.bf16 %v240_v9, %v236_v8  ;;  %v1147_v18 = vpack.c.bf16 %v242_v12, %v238_v10  ;;  %v656_v8 = vld [vmem:[#allocation7 + $0x110] sm:$0xff]  ;;  %v643_v12 = vld [vmem:[#allocation7 + $0xa8] sm:$0xff] }
  0x7e   :  { %1130 = vmatprep.subr.bf16.mxu1 %v1129_v22  ;;  %348 = vmatprep.mubr.f32.mxu0 %v61_v28  ;;  %v246_v22 = vld [vmem:[#allocation5 + $0x590] sm:$0xff]  ;;  %v1149_v23 = vpack.c.bf16 %v251_v16, %v247_v15  ;;  %v673_v1 = vld [vmem:[#allocation7 + $0x198] sm:$0xff]  ;;  %v675_v15 = vld [vmem:[#allocation7 + $0x1a8] sm:$0xff] }
  0x7f   :  { %514 = vmatprep.mubr.f32.mxu1 %v61_v28  ;;  %349 = vmatmul.mubr.f32.gmra.mrb[2].mxu0 %v60_v30  ;;  %v259_v28 = vld [vmem:[#allocation5 + $0x5f8] sm:$0xff]  ;;  %v1197_v9 = vpack.c.bf16 %v673_v1, %v672_v0  ;;  %v678_v40 = vld [vmem:[#allocation7 + $0x1c0] sm:$0xff]  ;;  %v683_v1 = vld [vmem:[#allocation7 + $0x1e8] sm:$0xff] }
  0x80   :  { %1032 = vmatpush1.bf16.msra.mxu0 %v1031_v29  ;;  %515 = vmatmul.mubr.f32.gmra.mrb[2].mxu1 %v60_v30  ;;  %v1051_v29 = vpack.c.bf16 %v248_v21, %v244_v20  ;;  %v1151_v30 = vpack.c.bf16 %v250_v24, %v246_v22  ;;  %v1153_v35 = vpack.c.bf16 %v259_v28, %v255_v27  ;;  %v63_v2 = vld [vmem:[#allocation2 + $0x38] sm:$0xff]  ;;  %v626_v20 = vld [vmem:[#allocation7 + $0x20] sm:$0xff]  ;;  %v627_v21 = vld [vmem:[#allocation7 + $0x28] sm:$0xff] }
  0x81   :  { %1132 = vmatpush1.bf16.msra.mxu1 %v1131_v31  ;;  %1034 = vmatprep.subr.bf16.mxu0 %v1033_v32  ;;  %v1053_v31 = vpack.c.bf16 %v257_v26, %v253_v25  ;;  %v252_v32 = vld [vmem:[#allocation5 + $0x5c0] sm:$0xff]  ;;  %v657_v10 = vld [vmem:[#allocation7 + $0x118] sm:$0xff]  ;;  %v659_v24 = vld [vmem:[#allocation7 + $0x128] sm:$0xff] }
  0x82   :  { %1134 = vmatprep.subr.bf16.mxu1 %v1133_v36  ;;  %354 = vmatprep.mubr.f32.mxu0 %v65_v42  ;;  %v258_v36 = vld [vmem:[#allocation5 + $0x5f0] sm:$0xff]  ;;  %v1055_v41 = vpack.c.bf16 %v256_v33, %v252_v32  ;;  %v67_v16 = vld [vmem:[#allocation2 + $0x58] sm:$0xff]  ;;  %v658_v22 = vld [vmem:[#allocation7 + $0x120] sm:$0xff] }
  0x83   :  { %520 = vmatprep.mubr.f32.mxu1 %v65_v42  ;;  %355 = vmatmul.mubr.f32.gmra.mrb[4].mxu0 %v64_v44  ;;  %v1155_v42 = vpack.c.bf16 %v258_v36, %v254_v34  ;;  %v644_v25 = vld [vmem:[#allocation7 + $0xb0] sm:$0xff]  ;;  %v645_v26 = vld [vmem:[#allocation7 + $0xb8] sm:$0xff]  ;;  %v682_v0 = vld [vmem:[#allocation7 + $0x1e0] sm:$0xff] }
  0x84   :  { %1036 = vmatpush1.bf16.msra.mxu0 %v1035_v43  ;;  %521 = vmatmul.mubr.f32.gmra.mrb[4].mxu1 %v64_v44  ;;  %v1057_v43 = vpack.c.bf16 %v265_v38, %v261_v37  ;;  %v260_v44 = vld [vmem:[#allocation5 + $0x600] sm:$0xff]  ;;  %v66_v27 = vld [vmem:[#allocation2 + $0x50] sm:$0xff]  ;;  %v1173_v32 = vpack.c.bf16 %v645_v26, %v644_v25  ;;  %v629_v34 = vld [vmem:[#allocation7 + $0x38] sm:$0xff] }
  0x85   :  { %1136 = vmatpush1.bf16.msra.mxu1 %v1135_v45  ;;  %1038 = vmatprep.subr.bf16.mxu0 %v1037_v46  ;;  %v264_v45 = vld [vmem:[#allocation5 + $0x620] sm:$0xff]  ;;  %v262_v46 = vld [vmem:[#allocation5 + $0x610] sm:$0xff]  ;;  %v661_v37 = vld [vmem:[#allocation7 + $0x138] sm:$0xff] }
  0x86   :  { %1138 = vmatprep.subr.bf16.mxu1 %v1137_v50  ;;  %873 = vmatprep.mubr.msk.f32.mxu0 %vm268_vm0, %v59_v56  ;;  %v639_v50 = vld [vmem:[#allocation7 + $0x88] sm:$0xff]  ;;  %v1059_v53 = vpack.c.bf16 %v264_v45, %v260_v44  ;;  %v1159_v54 = vpack.c.bf16 %v266_v48, %v262_v46  ;;  %v676_v28 = vld [vmem:[#allocation7 + $0x1b0] sm:$0xff]  ;;  %v646_v38 = vld [vmem:[#allocation7 + $0xc0] sm:$0xff] }
  0x87   :  { %876 = vmatprep.mubr.msk.f32.mxu1 %vm268_vm0, %v59_v56  ;;  %v1161_v55 = vpack.c.bf16 %v639_v50, %v638_v49  ;;  %v1193_v56 = vpack.c.bf16 %v671_v52, %v670_v51  ;;  %v628_v33 = vld [vmem:[#allocation7 + $0x30] sm:$0xff]  ;;  %v1177_v44 = vpack.c.bf16 %v647_v39, %v646_v38  ;;  %v630_v45 = vld [vmem:[#allocation7 + $0x40] sm:$0xff]  ;;  %v631_v46 = vld [vmem:[#allocation7 + $0x48] sm:$0xff] }
  0x88   :  { %1040 = vmatpush1.bf16.msra.mxu0 %v1039_v57  ;;  %v622_v57 = vld [vmem:[#allocation7] sm:$0xff]  ;;  %v663_v49 = vld [vmem:[#allocation7 + $0x148] sm:$0xff]  ;;  %v648_v50 = vld [vmem:[#allocation7 + $0xd0] sm:$0xff] }
  0x89   :  { %1140 = vmatpush1.bf16.msra.mxu1 %v1139_v58  ;;  %1042 = vmatprep.subr.bf16.mxu0 %v1041_v59  ;;  %v623_v58 = vld [vmem:[#allocation7 + $0x8] sm:$0xff]  ;;  %v654_v59 = vld [vmem:[#allocation7 + $0x100] sm:$0xff]  ;;  %v649_v51 = vld [vmem:[#allocation7 + $0xd8] sm:$0xff] }
  0x8a   :  { %1142 = vmatprep.subr.bf16.mxu1 %v1141_v63  ;;  %v58_v63 = vld [vmem:[#allocation2 + $0x10] sm:$0xff]  ;;  %v1163_v3 = vpack.c.bf16 %v623_v58, %v622_v57  ;;  %v1195_v4 = vpack.c.bf16 %v655_v60, %v654_v59  ;;  %v633_v58 = vld [vmem:[#allocation7 + $0x58] sm:$0xff] }
  0x8b   :  { %v680_v52 = vld [vmem:[#allocation7 + $0x1d0] sm:$0xff] }
  0x8c   :  { %1044 = vmatpush1.bf16.msra.mxu0 %v1043_v5  ;;  %v1165_v5 = vpack.c.bf16 %v641_v62, %v640_v61  ;;  %v632_v57 = vld [vmem:[#allocation7 + $0x50] sm:$0xff]  ;;  %v665_v61 = vld [vmem:[#allocation7 + $0x158] sm:$0xff]  ;;  %v650_v62 = vld [vmem:[#allocation7 + $0xe0] sm:$0xff] }
  0x8d   :  { %1144 = vmatpush1.bf16.msra.mxu1 %v1143_v6  ;;  %1046 = vmatprep.subr.bf16.mxu0 %v1045_v7  ;;  %v624_v6 = vld [vmem:[#allocation7 + $0x10] sm:$0xff]  ;;  %v625_v7 = vld [vmem:[#allocation7 + $0x18] sm:$0xff] }
  0x8e   :  { %1146 = vmatprep.subr.bf16.mxu1 %v1145_v11  ;;  %v642_v11 = vld [vmem:[#allocation7 + $0xa0] sm:$0xff]  ;;  %v664_v59 = vld [vmem:[#allocation7 + $0x150] sm:$0xff] }
  0x90   :  { %1048 = vmatpush1.bf16.msra.mxu0 %v1047_v17  ;;  %v1167_v17 = vpack.c.bf16 %v625_v7, %v624_v6  ;;  %v635_v6 = vld [vmem:[#allocation7 + $0x68] sm:$0xff]  ;;  %v1217_v7 = vpack.c.bf16 %v683_v1, %v682_v0 }
  0x91   :  { %1148 = vmatpush1.bf16.msra.mxu1 %v1147_v18  ;;  %1050 = vmatprep.subr.bf16.mxu0 %v1049_v19  ;;  %v1199_v18 = vpack.c.bf16 %v657_v10, %v656_v8  ;;  %v1169_v19 = vpack.c.bf16 %v643_v12, %v642_v11  ;;  %v666_v8 = vld [vmem:[#allocation7 + $0x160] sm:$0xff]  ;;  %v652_v12 = vld [vmem:[#allocation7 + $0xf0] sm:$0xff] }
  0x92   :  { %1150 = vmatprep.subr.bf16.mxu1 %v1149_v23  ;;  %v1201_v23 = vpack.c.bf16 %v675_v15, %v674_v14  ;;  %v684_v14 = vld [vmem:[#allocation7 + $0x1f0] sm:$0xff] }
  0x94   :  { %1052 = vmatpush1.bf16.msra.mxu0 %v1051_v29  ;;  %v677_v29 = vld [vmem:[#allocation7 + $0x1b8] sm:$0xff] }
  0x95   :  { %1152 = vmatpush1.bf16.msra.mxu1 %v1151_v30  ;;  %1054 = vmatprep.subr.bf16.mxu0 %v1053_v31  ;;  %v1171_v30 = vpack.c.bf16 %v627_v21, %v626_v20  ;;  %v1203_v31 = vpack.c.bf16 %v659_v24, %v658_v22  ;;  %v1205_v36 = vpack.c.bf16 %v677_v29, %v676_v28  ;;  %v668_v21 = vld [vmem:[#allocation7 + $0x170] sm:$0xff]  ;;  %v669_v22 = vld [vmem:[#allocation7 + $0x178] sm:$0xff] }
  0x96   :  { %1154 = vmatprep.subr.bf16.mxu1 %v1153_v35  ;;  %v660_v35 = vld [vmem:[#allocation7 + $0x130] sm:$0xff] }
  0x98   :  { %1056 = vmatpush1.bf16.msra.mxu0 %v1055_v41  ;;  %v679_v41 = vld [vmem:[#allocation7 + $0x1c8] sm:$0xff] }
  0x99   :  { %1156 = vmatpush1.bf16.msra.mxu1 %v1155_v42  ;;  %1058 = vmatprep.subr.bf16.mxu0 %v1057_v43  ;;  %v1175_v42 = vpack.c.bf16 %v629_v34, %v628_v33  ;;  %v1207_v43 = vpack.c.bf16 %v661_v37, %v660_v35  ;;  %v1209_v48 = vpack.c.bf16 %v679_v41, %v678_v40 }
  0x9a   :  { %1158 = vmatprep.subr.bf16.mxu1 %v1157_v47  ;;  %v662_v47 = vld [vmem:[#allocation7 + $0x140] sm:$0xff] }
  0x9c   :  { %1060 = vmatpush1.bf16.msra.mxu0 %v1059_v53  ;;  %v681_v53 = vld [vmem:[#allocation7 + $0x1d8] sm:$0xff] }
  0x9d   :  { %1160 = vmatpush1.bf16.msra.mxu1 %v1159_v54  ;;  %1162 = vmatprep.subr.bf16.mxu0 %v1161_v55  ;;  %v1179_v54 = vpack.c.bf16 %v631_v46, %v630_v45  ;;  %v1211_v55 = vpack.c.bf16 %v663_v49, %v662_v47  ;;  %v1213_v60 = vpack.c.bf16 %v681_v53, %v680_v52 }
  0x9e   :  { %1194 = vmatprep.subr.bf16.mxu1 %v1193_v56  ;;  %v1181_v56 = vpack.c.bf16 %v649_v51, %v648_v50 }
  0x9f   :  { %426 = vmatmul.mubr.f32.vlgmr.msra.gmra.mrb[0].mxu0 %v58_v63 }
  0xa0   :  { %592 = vmatmul.mubr.f32.vlgmr.msra.gmra.mrb[0].mxu1 %v58_v63  ;;  %874 = vmatprep.mubr.msk.f32.mxu0 %vm268_vm0, %v63_v2  ;;  %v651_v63 = vld [vmem:[#allocation7 + $0xe8] sm:$0xff] }
  0xa1   :  { %877 = vmatprep.mubr.msk.f32.mxu1 %vm268_vm0, %v63_v2  ;;  %1164 = vmatpush3.bf16.msra.mxu0 %v1163_v3  ;;  %v1183_v2 = vpack.c.bf16 %v633_v58, %v632_v57  ;;  %v1215_v3 = vpack.c.bf16 %v665_v61, %v664_v59 }
  0xa2   :  { %1196 = vmatpush3.bf16.msra.mxu1 %v1195_v4  ;;  %1166 = vmatprep.subr.bf16.mxu0 %v1165_v5  ;;  %v1185_v4 = vpack.c.bf16 %v651_v63, %v650_v62  ;;  %v634_v5 = vld [vmem:[#allocation7 + $0x60] sm:$0xff] }
  0xa3   :  { %432 = vmatmul.mubr.f32.gmra.mrb[2].mxu0 %v62_v13  ;;  %1198 = vmatprep.subr.bf16.mxu1 %v1197_v9  ;;  %v667_v9 = vld [vmem:[#allocation7 + $0x168] sm:$0xff]  ;;  %v1187_v10 = vpack.c.bf16 %v635_v6, %v634_v5 }
  0xa4   :  { %598 = vmatmul.mubr.f32.gmra.mrb[2].mxu1 %v62_v13  ;;  %875 = vmatprep.mubr.msk.f32.mxu0 %vm268_vm0, %v67_v16  ;;  %v1219_v11 = vpack.c.bf16 %v667_v9, %v666_v8  ;;  %v653_v13 = vld [vmem:[#allocation7 + $0xf8] sm:$0xff] }
  0xa5   :  { %878 = vmatprep.mubr.msk.f32.mxu1 %vm268_vm0, %v67_v16  ;;  %1168 = vmatpush3.bf16.msra.mxu0 %v1167_v17  ;;  %v1189_v15 = vpack.c.bf16 %v653_v13, %v652_v12  ;;  %v685_v16 = vld [vmem:[#allocation7 + $0x1f8] sm:$0xff]  ;;  %v636_v17 = vld [vmem:[#allocation7 + $0x70] sm:$0xff] }
  0xa6   :  { %1200 = vmatpush3.bf16.msra.mxu1 %v1199_v18  ;;  %1170 = vmatprep.subr.bf16.mxu0 %v1169_v19  ;;  %v637_v18 = vld [vmem:[#allocation7 + $0x78] sm:$0xff]  ;;  %v1221_v19 = vpack.c.bf16 %v685_v16, %v684_v14 }
  0xa7   :  { %438 = vmatmul.mubr.f32.gmra.mrb[4].mxu0 %v66_v27  ;;  %1202 = vmatprep.subr.bf16.mxu1 %v1201_v23  ;;  %v1191_v20 = vpack.c.bf16 %v637_v18, %v636_v17  ;;  %v1223_v23 = vpack.c.bf16 %v669_v22, %v668_v21 }
  0xa8   :  { %604 = vmatmul.mubr.f32.gmra.mrb[4].mxu1 %v66_v27 }
  0xa9   :  { %1172 = vmatpush3.bf16.msra.mxu0 %v1171_v30 }
  0xaa   :  { %1204 = vmatpush3.bf16.msra.mxu1 %v1203_v31  ;;  %1174 = vmatprep.subr.bf16.mxu0 %v1173_v32 }
  0xab   :  { %1206 = vmatprep.subr.bf16.mxu1 %v1205_v36 }
  0xad   :  { %1176 = vmatpush3.bf16.msra.mxu0 %v1175_v42 }
  0xae   :  { %1208 = vmatpush3.bf16.msra.mxu1 %v1207_v43  ;;  %1178 = vmatprep.subr.bf16.mxu0 %v1177_v44 }
  0xaf   :  { %1210 = vmatprep.subr.bf16.mxu1 %v1209_v48 }
  0xb1   :  { %1180 = vmatpush3.bf16.msra.mxu0 %v1179_v54 }
  0xb2   :  { %1212 = vmatpush3.bf16.msra.mxu1 %v1211_v55  ;;  %1182 = vmatprep.subr.bf16.mxu0 %v1181_v56 }
  0xb3   :  { %1214 = vmatprep.subr.bf16.mxu1 %v1213_v60 }
  0xb5   :  { %1184 = vmatpush3.bf16.msra.mxu0 %v1183_v2 }
  0xb6   :  { %1216 = vmatpush3.bf16.msra.mxu1 %v1215_v3  ;;  %1186 = vmatprep.subr.bf16.mxu0 %v1185_v4 }
  0xb7   :  { %1218 = vmatprep.subr.bf16.mxu1 %v1217_v7 }
  0xb9   :  { %1188 = vmatpush3.bf16.msra.mxu0 %v1187_v10 }
  0xba   :  { %1220 = vmatpush3.bf16.msra.mxu1 %v1219_v11  ;;  %1190 = vmatprep.subr.bf16.mxu0 %v1189_v15 }
  0xbb   :  { %1222 = vmatprep.subr.bf16.mxu1 %v1221_v19 }
  0xbd   :  { %1192 = vmatpush3.bf16.msra.mxu0 %v1191_v20 }
  0xbe   :  { %1224 = vmatpush3.bf16.msra.mxu1 %v1223_v23 }
 0x172   :  { %v427_v24 = vpop.f32.mrb[0].mxu0 }
 0x173   :  { %v593_v25 = vpop.f32.mrb[0].mxu1  ;;  %v429_v26 = vpop.f32.mrb[1].mxu0  ;;  %v610_v29 = vmul.f32 %v427_v24, %v427_v24 }
 0x174   :  { %v611_v27 = vmul.f32 %v429_v26, %v429_v26  ;;  %v595_v28 = vpop.f32.mrb[1].mxu1  ;;  %v612_v31 = vmul.f32 %v593_v25, %v593_v25 }
 0x175   :  { %v613_v30 = vmul.f32 %v595_v28, %v595_v28 }
 0x176   :  { %v433_v32 = vpop.f32.mrb[2].mxu0  ;;  %750 = vmatprep.mubr.f32.mxu0 %v611_v27 }
 0x177   :  { %v599_v33 = vpop.f32.mrb[2].mxu1  ;;  %830 = vmatprep.mubr.f32.mxu1 %v613_v30  ;;  %v435_v34 = vpop.f32.mrb[3].mxu0  ;;  %751 = vmatmul.mubr.f32.vlgmr.msra.gmra.mrb[6].mxu0 %v610_v29  ;;  %v614_v37 = vmul.f32 %v433_v32, %v433_v32 }
 0x178   :  { %v615_v35 = vmul.f32 %v435_v34, %v435_v34  ;;  %v601_v36 = vpop.f32.mrb[3].mxu1  ;;  %831 = vmatmul.mubr.f32.vlgmr.msra.gmra.mrb[6].mxu1 %v612_v31  ;;  %v616_v39 = vmul.f32 %v599_v33, %v599_v33 }
 0x179   :  { %v617_v38 = vmul.f32 %v601_v36, %v601_v36 }
 0x17a   :  { %v439_v40 = vpop.f32.mrb[4].mxu0  ;;  %755 = vmatprep.mubr.f32.mxu0 %v615_v35 }
 0x17b   :  { %v605_v41 = vpop.f32.mrb[4].mxu1  ;;  %835 = vmatprep.mubr.f32.mxu1 %v617_v38  ;;  %v441_v42 = vpop.f32.mrb[5].mxu0  ;;  %756 = vmatmul.mubr.f32.gmra.mrb[8].mxu0 %v614_v37  ;;  %v618_v45 = vmul.f32 %v439_v40, %v439_v40 }
 0x17c   :  { %v619_v43 = vmul.f32 %v441_v42, %v441_v42  ;;  %v607_v44 = vpop.f32.mrb[5].mxu1  ;;  %836 = vmatmul.mubr.f32.gmra.mrb[8].mxu1 %v616_v39  ;;  %v620_v47 = vmul.f32 %v605_v41, %v605_v41 }
 0x17d   :  { %v621_v46 = vmul.f32 %v607_v44, %v607_v44 }
 0x17e   :  { %760 = vmatprep.mubr.f32.mxu0 %v619_v43 }
 0x17f   :  { %840 = vmatprep.mubr.f32.mxu1 %v621_v46  ;;  %761 = vmatmul.mubr.f32.gmra.mrb[10].mxu0 %v618_v45 }
 0x180   :  { %841 = vmatmul.mubr.f32.gmra.mrb[10].mxu1 %v620_v47 }
 0x24a   :  { %v911_v48 = vpop.f32.mrb[6].mxu0 }
 0x24b   :  { %v952_v49 = vpop.f32.mrb[6].mxu1  ;;  %v912_v50 = vpop.f32.mrb[7].mxu0 }
 0x24c   :  { %v913_v51 = vadd.f32 %v912_v50, %v911_v48  ;;  %v953_v52 = vpop.f32.mrb[7].mxu1 }
 0x24d   :  { %v954_v53 = vadd.f32 %v953_v52, %v952_v49 }
 0x24e   :  { %v753_v54 = vadd.f32 1e-08, %v913_v51  ;;  %v914_v55 = vpop.f32.mrb[8].mxu0 }
 0x24f   :  { %v955_v56 = vpop.f32.mrb[8].mxu1  ;;  %v915_v57 = vpop.f32.mrb[9].mxu0 }
 0x250   :  { %v833_v58 = vadd.f32 %v954_v53, %v753_v54  ;;  %v916_v59 = vadd.f32 %v915_v57, %v914_v55  ;;  %v956_v60 = vpop.f32.mrb[9].mxu1 }
 0x251   :  { %v957_v61 = vadd.f32 %v956_v60, %v955_v56 }
 0x252   :  { %1245 = vlog2.f32 %v833_v58  ;;  %v758_v62 = vadd.f32 1e-08, %v916_v59  ;;  %v917_v63 = vpop.f32.mrb[10].mxu0 }
 0x253   :  { %v958_v0 = vpop.f32.mrb[10].mxu1  ;;  %v918_v1 = vpop.f32.mrb[11].mxu0 }
 0x254   :  { %v838_v2 = vadd.f32 %v957_v61, %v758_v62  ;;  %v919_v3 = vadd.f32 %v918_v1, %v917_v63  ;;  %v959_v4 = vpop.f32.mrb[11].mxu1 }
 0x255   :  { %v960_v5 = vadd.f32 %v959_v4, %v958_v0 }
 0x256   :  { %1247 = vlog2.f32 %v838_v2  ;;  %v763_v6 = vadd.f32 1e-08, %v919_v3 }
 0x258   :  { %v843_v7 = vadd.f32 %v960_v5, %v763_v6 }
 0x25a   :  { %1249 = vlog2.f32 %v843_v7 }
 0x25c   :  { %v1246_v8 = vpop.eup %1245 }
 0x25d   :  { %v847_v9 = vmul.f32 0.6931472, %v1246_v8 }
 0x25f   :  { %852 = vst [vmem:[#allocation8] sm:$0xff] %v847_v9 }
 0x260   :  { %v1248_v10 = vpop.eup %1247 }
 0x261   :  { %v849_v11 = vmul.f32 0.6931472, %v1248_v10 }
 0x263   :  { %853 = vst [vmem:[#allocation8 + $0x8] sm:$0xff] %v849_v11 }
 0x264   :  { %v1250_v12 = vpop.eup %1249 }
 0x265   :  { %v851_v13 = vmul.f32 0.6931472, %v1250_v12 }
 0x267   :  { %854 = vst [vmem:[#allocation8 + $0x10] sm:$0xff] %v851_v13 }
 0x268   :  { %1328 = shalt.err (!%p1325_p0)
}
 0x269   :  { %s1329_s27 = scalar_lea.hbm %s1443_s3, 384 }
 0x26a   :  { %p1330_p1 = scmp.ne.s32.totalorder %s1443_s3, %s1329_s27  ;;  %p1333_p2 = scmp.lt.u32.totalorder %s1329_s27, %s1443_s3 }
 0x26c   :  { %p1335_p3 = pnand %p1333_p2, %p1330_p1 }
 0x26e   :  { %1338 = shalt.err (!%p1335_p3)
}
 0x26f   :  { %866 = dma.vmem_to_hbm [thread:$0]  %s861_s23, 384, %s1443_s3, [#allocation4], %s1350_s0, %s1350_s0, %s1351_s15  }
 0x270   :  { %1343 = dma.done.wait [#allocation4], 384  }
 0x271   :  { %1344 = vsyncadd [#allocation4], 4294966912 }
 0x272   :  { %870 = vsyncpa [#allocation3], 1 }
 0x273   :  { %871 = vsyncpa [#allocation6], 1 }
 0x274   :  { %872 = vsyncpa [#allocation4], 1 }

</bundles_post_ra>
